<compile_context>
chip_gen: v7x
topology: tpu7x:2x2x1
jax: 0.10.0
libtpu: 0.0.40
codegen_flags: <defaults>
</compile_context>

<pallas_src>
import math
from functools import partial

import jax
import jax.numpy as jnp
from jax import lax
from jax.experimental import pallas as pl
from jax.experimental.pallas import tpu as pltpu


def make_positional_encoding(d_model: int, max_len: int = 5000) -> jnp.ndarray:
    """Reference pe buffer, identical to the PyTorch __init__ (even d_model)."""
    assert d_model % 2 == 0, "PyTorch reference layout requires even d_model"
    position = jnp.arange(0, max_len, dtype=jnp.float32)[:, None]            # (max_len, 1)
    div_term = jnp.exp(jnp.arange(0, d_model, 2, dtype=jnp.float32)
                       * (-(math.log(10000.0) / d_model)))                   # (d_model/2,)
    angles = position * div_term                                             # (max_len, d/2)
    pe = jnp.stack([jnp.sin(angles), jnp.cos(angles)], axis=-1)              # sin even / cos odd
    return pe.reshape(max_len, d_model)[None, :, :]                          # (1, max_len, d)


def _pos_enc_kernel(const_ref, x_ref, o_ref, *, pos_per_row):
    # const_ref : (3, L) f32, rows = [position-offset-within-row, inv_freq, even-mask]
    # x_ref/o_ref: (1, rows_per_tile, L) block for one batch element.
    pos_in_row = const_ref[0, :]          # (L,)  = j // d_model
    inv_freq   = const_ref[1, :]          # (L,)  = exp(-2*((j % d)//2) * ln(1e4)/d)
    even_mask  = const_ref[2, :]          # (L,)  = 1.0 where feature index is even

    rows_per_tile = x_ref.shape[1]
    row_start = pl.program_id(0) * rows_per_tile
    row = lax.broadcasted_iota(jnp.int32, x_ref.shape, 1) + row_start        # global row idx
    # sequence position of every element of the tile (exact integers in f32)
    position = row.astype(jnp.float32) * float(pos_per_row) + pos_in_row
    angle = position * inv_freq
    # sin/cos run on the EUP slot, which is idle in this mem-bound add.
    pe = jnp.where(even_mask > 0.5, jnp.sin(angle), jnp.cos(angle))
    o_ref[...] = (x_ref[...].astype(jnp.float32) + pe).astype(o_ref.dtype)


def _choose_pos_per_row(seq: int, d_model: int, max_lane: int = 1024) -> int:
    """Fold `r` consecutive positions into one row so r*d_model % 128 == 0."""
    if d_model >= 128:
        return 1
    base = 128 // math.gcd(d_model, 128)
    if seq % base != 0:
        return 1   # fallback: keep native layout (masked stores, still correct)
    r = base
    while (2 * r) * d_model <= max_lane and seq % (2 * r) == 0:
        r *= 2
    return r


def positional_encoding_forward(x: jnp.ndarray,
                                *, target_tile_bytes: int = 2 * 1024 * 1024) -> jnp.ndarray:
    """x: (B, S, D). Returns x + pe[:, :S] with pe generated in-kernel."""
    B, S, D = x.shape

    # ---- lane-dense view: (B, S, D) -> (B, num_rows, L) with L = r*D ----
    r = _choose_pos_per_row(S, D)
    L = r * D
    num_rows = S // r
    x2 = x.reshape(B, num_rows, L)                       # contiguous, bitcast reshape

    # ---- row-tile size: ~2 MiB per tile, multiple of 8 rows (or full) ----
    row_bytes = L * x.dtype.itemsize
    rows_fit = max(1, target_tile_bytes // row_bytes)
    if rows_fit >= num_rows:
        tr = num_rows
    else:
        tr = max(8, (rows_fit // 8) * 8)

    # ---- tiny per-lane constants (fetched once, resident across the grid) ----
    j = jnp.arange(L, dtype=jnp.int32)
    feat = j % D
    pos_in_row = (j // D).astype(jnp.float32)
    inv_freq = jnp.exp((feat // 2).astype(jnp.float32)
                       * jnp.float32(-2.0 * math.log(10000.0) / D))
    even_mask = (feat % 2 == 0).astype(jnp.float32)
    const = jnp.stack([pos_in_row, inv_freq, even_mask], axis=0)   # (3, L) f32

    grid = (pl.cdiv(num_rows, tr), B)                    # batch innermost

    out2 = pl.pallas_call(
        partial(_pos_enc_kernel, pos_per_row=r),
        out_shape=jax.ShapeDtypeStruct((B, num_rows, L), x.dtype),
        grid_spec=pltpu.PrefetchScalarGridSpec(
            num_scalar_prefetch=0,
            grid=grid,
            in_specs=[
                pl.BlockSpec((3, L), lambda rt, b: (0, 0)),        # constants: resident
                pl.BlockSpec((1, tr, L), lambda rt, b: (b, rt, 0)),  # x tile
            ],
            out_specs=pl.BlockSpec((1, tr, L), lambda rt, b: (b, rt, 0)),
        ),
        compiler_params=pltpu.CompilerParams(
            dimension_semantics=("parallel", "parallel"),          # v7x megacore sharding
        ),
    )(const, x2)

    return out2.reshape(B, S, D)


if __name__ == "__main__":
    key = jax.random.PRNGKey(0)

    # --- demo shape implied by the module: (batch, seq, d_model) ---
    B, S, D = 2, 8, 32
    MAX_LEN = 64
    x = jax.random.normal(key, (B, S, D), dtype=jnp.float32)

    out = positional_encoding_forward(x)
    out = jax.block_until_ready(out)

    pe = make_positional_encoding(D, max_len=MAX_LEN)
    ref = x + pe[:, :S]
    assert out.shape == (B, S, D)
    assert jnp.allclose(out, ref, atol=1e-5, rtol=1e-5), "mismatch vs reference (D=32 path)"

    # --- second check exercising the already-lane-dense (D >= 128) path ---
    B2, S2, D2 = 2, 16, 128
    x2 = jax.random.normal(jax.random.PRNGKey(1), (B2, S2, D2), dtype=jnp.float32)
    out2 = jax.block_until_ready(positional_encoding_forward(x2))
    ref2 = x2 + make_positional_encoding(D2, max_len=32)[:, :S2]
    assert jnp.allclose(out2, ref2, atol=1e-5, rtol=1e-5), "mismatch vs reference (D=128 path)"

    print("KERNEL_OK")
</pallas_src>

<mosaic_0001>
module attributes {stable_mosaic.version = 11 : i64} {
  func.func @_pos_enc_kernel(%arg0: i32, %arg1: i32, %arg2: memref<3x256xf32, #tpu.memory_space<vmem>>, %arg3: memref<1x1x256xf32, #tpu.memory_space<vmem>>, %arg4: memref<1x1x256xf32, #tpu.memory_space<vmem>>) attributes {dimension_semantics = [#tpu.dimension_semantics<parallel>, #tpu.dimension_semantics<parallel>], iteration_bounds = array<i64: 1, 2>, scalar_prefetch = 0 : i64, scratch_operands = 0 : i64, tpu.core_type = #tpu.core_type<tc>, window_params = [{pipeline_mode = #tpu.pipeline_mode<synchronous>, transform_indices = @transform_0, window_bounds = array<i64: 3, 256>}, {transform_indices = @transform_1, window_bounds = array<i64: 1, 1, 256>}, {transform_indices = @transform_2, window_bounds = array<i64: 1, 1, 256>}]} {
    %c0 = arith.constant 0 : index
    %c0_0 = arith.constant 0 : index
    %0 = vector.load %arg2[%c0, %c0_0] : memref<3x256xf32, #tpu.memory_space<vmem>>, vector<1x256xf32>
    %1 = vector.shape_cast %0 : vector<1x256xf32> to vector<256xf32>
    %c1 = arith.constant 1 : index
    %c0_1 = arith.constant 0 : index
    %2 = vector.load %arg2[%c1, %c0_1] : memref<3x256xf32, #tpu.memory_space<vmem>>, vector<1x256xf32>
    %3 = vector.shape_cast %2 : vector<1x256xf32> to vector<256xf32>
    %c2 = arith.constant 2 : index
    %c0_2 = arith.constant 0 : index
    %4 = vector.load %arg2[%c2, %c0_2] : memref<3x256xf32, #tpu.memory_space<vmem>>, vector<1x256xf32>
    %5 = vector.shape_cast %4 : vector<1x256xf32> to vector<256xf32>
    %c1_i32 = arith.constant 1 : i32
    %6 = arith.muli %arg0, %c1_i32 : i32
    %7 = tpu.iota {dimensions = array<i32: 1>} : vector<1x1x256xi32>
    %8 = vector.broadcast %6 : i32 to vector<1x1x256xi32>
    %9 = arith.addi %7, %8 : vector<1x1x256xi32>
    %10 = arith.sitofp %9 : vector<1x1x256xi32> to vector<1x1x256xf32>
    %cst = arith.constant 8.000000e+00 : f32
    %11 = vector.broadcast %cst : f32 to vector<1x1x256xf32>
    %12 = arith.mulf %10, %11 : vector<1x1x256xf32>
    %13 = vector.shape_cast %1 : vector<256xf32> to vector<1x1x256xf32>
    %14 = arith.addf %12, %13 : vector<1x1x256xf32>
    %15 = vector.shape_cast %3 : vector<256xf32> to vector<1x1x256xf32>
    %16 = arith.mulf %14, %15 : vector<1x1x256xf32>
    %cst_3 = arith.constant 5.000000e-01 : f32
    %17 = vector.broadcast %cst_3 : f32 to vector<256xf32>
    %18 = arith.cmpf ogt, %5, %17 : vector<256xf32>
    %19 = math.sin %16 : vector<1x1x256xf32>
    %20 = math.cos %16 : vector<1x1x256xf32>
    %21 = vector.shape_cast %18 : vector<256xi1> to vector<1x1x256xi1>
    %22 = arith.select %21, %19, %20 : vector<1x1x256xi1>, vector<1x1x256xf32>
    %c0_4 = arith.constant 0 : index
    %c0_5 = arith.constant 0 : index
    %c0_6 = arith.constant 0 : index
    %23 = vector.load %arg3[%c0_4, %c0_5, %c0_6] : memref<1x1x256xf32, #tpu.memory_space<vmem>>, vector<1x1x256xf32>
    %24 = arith.addf %23, %22 : vector<1x1x256xf32>
    %c0_7 = arith.constant 0 : index
    %c0_8 = arith.constant 0 : index
    %c0_9 = arith.constant 0 : index
    %25 = vector.load %arg4[%c0_7, %c0_8, %c0_9] : memref<1x1x256xf32, #tpu.memory_space<vmem>>, vector<1x1x256xf32>
    tpu.vector_store %arg4[%c0_7, %c0_8, %c0_9], %24 {strides = array<i32>} : memref<1x1x256xf32, #tpu.memory_space<vmem>>, vector<1x1x256xf32>,
    return
  }
  func.func @transform_0(%arg0: i32, %arg1: i32) -> (i32, i32) {
    %c0_i32 = arith.constant 0 : i32
    %c0_i32_0 = arith.constant 0 : i32
    %c0_i32_1 = arith.constant 0 : i32
    return %c0_i32, %c0_i32_0 : i32, i32
  }
  func.func @transform_1(%arg0: i32, %arg1: i32) -> (i32, i32, i32) {
    %c0_i32 = arith.constant 0 : i32
    %c0_i32_0 = arith.constant 0 : i32
    return %arg1, %arg0, %c0_i32 : i32, i32, i32
  }
  func.func @transform_2(%arg0: i32, %arg1: i32) -> (i32, i32, i32) {
    %c0_i32 = arith.constant 0 : i32
    %c0_i32_0 = arith.constant 0 : i32
    return %arg1, %arg0, %c0_i32 : i32, i32, i32
  }
}

</mosaic_0001>

<bundles_post_ra>
// kernel: tpu_custom_call.1
= control target key start
LH: loop header
LB: loop body
LE: loop exit
PB: predicated region body
PF: predicated region fallthrough
CT: control target
= control target key end

     0   :  { %7 = vsyncpa [#allocation3], 0  ;;  %s1408_s0 = inlined_call_operand.hbm [shape: f32[3,256], index: 0, kind: input, shape index: {}]   ;;  %s1409_s1 = inlined_call_operand.hbm [shape: f32[2,1,256], index: 1, kind: input, shape index: {}]   ;;  %s1410_s2 = inlined_call_operand.hbm [shape: f32[2,1,256], index: 2, kind: output, shape index: {}]  }
   0x1   :  { %8 = vsyncpa [#allocation6], 0 }
   0x2   :  { %10 = vsyncpa [#allocation6 + $0x1], 0 }
   0x3   :  { %11 = vsyncpa [#allocation4], 0 }
   0x4   :  { %13 = vsyncpa [#allocation4 + $0x1], 0  ;;  %s1102_s9 = smov 0   ;;  %s1104_s10 = smov 0  }
   0x5   :  { %s1106_s11 = smov 0   ;;  %s1108_s12 = smov 0  }
   0x6   :  { %s1110_s13 = smov 0   ;;  %s1112_s14 = smov 0  }
   0x7 LB: > { %s800_s15 = sadd.s32 4294967295, %s1075_s14   ;;  %s801_s16 = sadd.s32 4294967294, %s1075_s14   ;;  %s1075_s14 = sphi %s1112_s14, %s19_s14   ;;  %s1071_s13 = sphi %s1110_s13, %s1435_s13   ;;  %s1067_s12 = sphi %s1108_s12, %s1434_s12   ;;  %s1063_s11 = sphi %s1106_s11, %s1433_s11   ;;  %s1059_s10 = sphi %s1104_s10, %s1432_s10   ;;  %s1055_s9 = sphi %s1102_s9, %s1431_s9  }
   0x8   : > { %p74_p0 = scmp.ne.s32.totalorder %s1059_s10, %s1055_s9  ;;  %p1136_p1 = scmp.eq.s32.totalorder %s800_s15, 0 }
   0x9   : > { %p1140_p2 = scmp.eq.s32.totalorder %s800_s15, 1  ;;  %p106_p3 = scmp.eq.s32.totalorder %s801_s16, 1 }
   0xa   : > { %s1415_s17 = scalar_select %p1136_p1, 1, 0 }
   0xb   : > { %s1416_s18 = scalar_select %p1140_p2, 1, 0 }
   0xc   : > { %p1146_p4 = por %p1136_p1, %p74_p0  ;;  %p802_p5 = scmp.ge.s32.totalorder %s1075_s14, 1 }
   0xd   : > { %p1151_p6 = por %p106_p3, %p74_p0  ;;  %p113_p7 = scmp.lt.s32.totalorder %s1075_s14, 3 }
   0xe   : > { %s1417_s19 = scalar_select %p1146_p4, 1, 0 }
   0xf   : > { %s1418_s20 = scalar_select %p1151_p6, 1, 0 }
  0x10   : > { %p1156_p8 = pnand %p802_p5, %p113_p7  ;;  %s1077_s22 = smov [#allocation2]  }
  0x11   : > { %s126_s23 = sshll.u32 %s1077_s22, 4  ;;  %s28_s25 = sadd.s32 1, %s1071_s13  ;;  %s127_s23 = int_to_ptr.vmem [resolvable:$true] %s126_s23 }
  0x12   : > { %s1419_s21 = scalar_select %p1156_p8, 1, 0 }
  0x13   : > { %p851_p10 = pneg %p1156_p8  ;;  %s61_s26 = sadd.s32 1, %s1063_s11 }
  0x14   : > { %p1171_p12 = scmp.ge.s32.totalorder %s28_s25, 2  ;;  %s931_s30 = scalar_lea.hbm %s1408_s0, 128 }
  0x15   : > { %p1165_p11 = pnand %p851_p10, %p1136_p1  ;;  %p932_p13 = scmp.ne.s32.totalorder %s1408_s0, %s931_s30 }
  0x16   : > { %s1421_s27 = scalar_select %p1171_p12, 1, 0 }
  0x17   : > { %p933_p0 = pneg %p1165_p11  ;;  %p938_p7 = scmp.lt.u32.totalorder %s931_s30, %s1408_s0 }
  0x19   : > { %p934_p3 = pnand %p933_p0, %p932_p13 }
  0x1b   : > { %p935_p5 = pneg %p934_p3 }
  0x1d   : > { %p940_p10 = pnand %p938_p7, %p935_p5 }
  0x1f   : > { %943 = shalt.err (!%p940_p10)
}
  0x20   : > { %s944_s7 = scalar_lea.vmem %s127_s23, 128  ;;  %p952_p1 = scmp.lt.s32.totalorder %s127_s23, %s127_s23 }
  0x21   : > { %p945_p9 = scmp.ne.s32.totalorder %s127_s23, %s944_s7  ;;  %p953_p8 = scmp.lt.s32.totalorder %s944_s7, %s944_s7 }
  0x23   : > { %p947_p6 = pnand %p945_p9, %p933_p0  ;;  %p954_p2 = por %p953_p8, %p952_p1 }
  0x25   : > { %p948_p4 = pneg %p947_p6 }
  0x27   : > { %p955_p12 = pnand %p954_p2, %p948_p4 }
  0x29   : > { %958 = shalt.err (!%p955_p12)
}
  0x2a   : > { %854 = dma.hbm_to_vmem [thread:$0]  (!%p1165_p11), %s1408_s0, 128, %s127_s23, [#allocation3]  }
  0x2b   : > { %p1422_p1 = scmp.ne.s32.totalorder %s1421_s27, 0  ;;  %p68_p2 = scmp.ne.s32.totalorder %s1063_s11, %s1059_s10 }
  0x2c   : > { %p69_p4 = scmp.eq.s32.totalorder %s1075_s14, 0  ;;  %p864_p6 = scmp.lt.s32.totalorder %s1075_s14, 2 }
  0x2d   : > { %s1437_s25 = smov (%p1422_p1, %s28_s25), 0  ;;  %p1423_p12 = scmp.ne.s32.totalorder %s1416_s18, 0 }
  0x2e   : > { %s56_s16 = ssub.s32 %s1071_s13, %s1437_s25  ;;  %p70_p9 = por %p69_p4, %p68_p2 }
  0x2f   : > { %p59_p8 = scmp.eq.s32.totalorder %s56_s16, 0  ;;  %p1203_p13 = por %p1423_p12, %p68_p2 }
  0x30   : > { %s137_s24 = sand.u32 1, %s1063_s11   ;;  %s833_s27 = sshll.u32 %s1071_s13, 5 }
  0x31   : > { %s1211_s28 = scalar_select %p59_p8, %s1063_s11, %s61_s26  }
  0x32   : > { %s805_s23 = sshll.u32 %s137_s24, 1  ;;  %s1217_s3 = scalar_lea.hbm %s1409_s1, %s833_s27 }
  0x33   : > { %s141_s18 = scalar_lea.vmem [#allocation5], %s805_s23  ;;  %p1221_p11 = pnand %p864_p6, %p70_p9 }
  0x34   : > { %s151_s4 = sshll.u32 %s141_s18, 4  ;;  %s138_s26 = scalar_lea.sflag [#allocation6], %s137_s24  ;;  %s1219_s4 = int_to_ptr.vmem [resolvable:$true] %s151_s4 }
  0x35   : > { %s959_s6 = scalar_lea.hbm %s1217_s3, 32  ;;  %p961_p3 = pneg %p1221_p11 }
  0x36   : > { %p960_p0 = scmp.ne.s32.totalorder %s1217_s3, %s959_s6  ;;  %s964_s15 = scalar_lea.hbm %s1409_s1, 64 }
  0x37   : > { %p965_p10 = scmp.lt.u32.totalorder %s1217_s3, %s1409_s1  ;;  %p966_p1 = scmp.lt.u32.totalorder %s964_s15, %s959_s6 }
  0x38   : > { %p962_p5 = pnand %p961_p3, %p960_p0  ;;  %p968_p4 = scmp.lt.u32.totalorder %s959_s6, %s1217_s3 }
  0x39   : > { %p967_p2 = por %p966_p1, %p965_p10 }
  0x3a   : > { %p963_p7 = pneg %p962_p5 }
  0x3b   : > { %p969_p6 = por %p968_p4, %p967_p2 }
  0x3d   : > { %p970_p8 = pnand %p969_p6, %p963_p7 }
  0x3f   : > { %973 = shalt.err (!%p970_p8)
}
  0x40   : > { %s974_s24 = scalar_lea.vmem %s1219_s4, 32  ;;  %s1078_s27 = smov [#allocation5]  }
  0x41   : > { %p975_p9 = scmp.ne.s32.totalorder %s1219_s4, %s974_s24  ;;  %s979_s29 = sshll.u32 %s1078_s27, 4  ;;  %s980_s29 = int_to_ptr.vmem [resolvable:$false] %s979_s29 }
  0x42   : > { %s981_s30 = scalar_lea.vmem %s980_s29, 64  ;;  %p982_p5 = scmp.lt.s32.totalorder %s1219_s4, %s980_s29 }
  0x43   : > { %p977_p12 = pnand %p975_p9, %p961_p3  ;;  %p983_p10 = scmp.lt.s32.totalorder %s981_s30, %s974_s24 }
  0x45   : > { %p978_p0 = pneg %p977_p12  ;;  %p984_p1 = por %p983_p10, %p982_p5 }
  0x47   : > { %p985_p2 = pnand %p984_p1, %p978_p0 }
  0x49   : > { %988 = shalt.err (!%p985_p2)
}
  0x4a   : > { %858 = dma.hbm_to_vmem [thread:$0]  (!%p1221_p11), %s1217_s3, 32, %s1219_s4, %s138_s26  }
  0x4b   : > { %p1426_p7 = scmp.ne.s32.totalorder %s1419_s21, 0 }
  0x4c   : > { %p1427_p3 = scmp.ne.s32.totalorder (!%p1426_p7), %s1415_s17, 0 }
  0x4d   : > { %160 = sbr.rel (%p1426_p7) target bundleno = 213 (0xd5), region = 28 }
  0x54   : > { %1042 = dma.done.wait (%p1427_p3), [#allocation3], 128  }
  0x55   : > { %1044 = vsyncadd (%p1427_p3), [#allocation3], 4294967168  ;;  %s1257_s18 = sand.u32 1, %s1059_s10   ;;  %p1428_p11 = scmp.ne.s32.totalorder %s1417_s19, 0 }
  0x56   : > { %s810_s5 = sshll.u32 %s1257_s18, 1  ;;  %s167_s6 = scalar_lea.sflag [#allocation6], %s1257_s18 }
  0x57   : > { %s1263_s3 = scalar_lea.vmem [#allocation5], %s810_s5 }
  0x58   : > { %1046 = dma.done.wait (%p1428_p11), %s167_s6, 32  }
  0x59   : > { %1048 = vsyncadd (%p1428_p11), %s167_s6, 4294967264  ;;  %v196_v0 = vlaneseq  ;;  %v191_v6 = vld [vmem:[#allocation2] ss:$4 sm:$0x3]  ;;  %v1079_v38 = vmov 683565275  }
  0x5a   : > { %v193_v7 = vld [vmem:[#allocation2 + $0x1] ss:$4 sm:$0x3]  ;;  %v1080_v40 = vmov 2475754826   ;;  %s834_s17 = sshll.u32 %s1067_s12, 5 }
  0x5b   : > { %v1270_v1 = vshrl.u32 %v196_v0, 7  ;;  %v1081_v42 = vmov 2131351028   ;;  %v1082_v44 = vmov 2102212464   ;;  %s190_s19 = scalar_lea.vmem [#allocation7], %s810_s5  ;;  %s1359_s7 = scalar_lea.hbm %s1410_s2, %s834_s17 }
  0x5c   : > { %v1083_v46 = vmov 920167782   ;;  %v1084_v54 = vmov 1326507024   ;;  %s704_s21 = sshll.u32 %s190_s19, 4  ;;  %s688_s8 = scalar_lea.sflag [#allocation4], %s1257_s18  ;;  %s1361_s21 = int_to_ptr.vmem [resolvable:$true] %s704_s21 }
  0x5d   : > { %v200_v2 = vcvt.s32.f32 %v1270_v1  ;;  %v205_v3 = vsub.s32 0, %v1270_v1  ;;  %v209_v4 = vsub.s32 1, %v1270_v1  ;;  %s989_s12 = scalar_lea.vmem %s1361_s21, 32  ;;  %s1086_s15 = smov [#allocation7]  }
  0x5e   : > { %p990_p4 = scmp.ne.s32.totalorder %s1361_s21, %s989_s12  ;;  %s993_s16 = sshll.u32 %s1086_s15, 4  ;;  %s994_s16 = int_to_ptr.vmem [resolvable:$false] %s993_s16 }
  0x5f   : > { %v201_v5 = vmul.f32 8.0, %v200_v2  ;;  %v206_v8 = vrot.slane %v191_v6, %v205_v3  ;;  %v210_v9 = vrot.slane %v191_v6, %v209_v4  ;;  %v219_v10 = vrot.slane %v193_v7, %v205_v3  ;;  %s995_s23 = scalar_lea.vmem %s994_s16, 64  ;;  %p996_p9 = scmp.lt.s32.totalorder %s1361_s21, %s994_s16 }
  0x60   : > { %v223_v11 = vrot.slane %v193_v7, %v209_v4  ;;  %p991_p6 = pnand %p990_p4, %p1203_p13  ;;  %p997_p12 = scmp.lt.s32.totalorder %s995_s23, %s989_s12 }
  0x61   : > { %v213_v12 = vadd.f32 %v206_v8, %v201_v5  ;;  %v214_v13 = vadd.f32 %v210_v9, %v201_v5 }
  0x62   : > { %p992_p8 = pneg %p991_p6  ;;  %p998_p0 = por %p997_p12, %p996_p9 }
  0x63   : > { %v1275_v14 = vmul.f32 %v219_v10, %v213_v12  ;;  %v1277_v15 = vmul.f32 %v223_v11, %v214_v13 }
  0x64   : > { %p999_p5 = pnand %p998_p0, %p992_p8 }
  0x65   : > { %v229_v16 = vand.u32 2147483647, %v1275_v14  ;;  %v232_v17 = vand.u32 2139095040, %v1275_v14  ;;  %v333_v18 = vand.u32 2147483647, %v1277_v15  ;;  %v336_v19 = vand.u32 2139095040, %v1277_v15 }
  0x66   : > { %vm231_vm14 = vcmp.lt.s32.totalorder %v1275_v14, 0 }
  0x67   : > { %v233_v20 = vshrl.u32 %v232_v17, 23  ;;  %v236_v21 = vand.u32 8388607, %v229_v16  ;;  %v337_v22 = vshrl.u32 %v336_v19, 23  ;;  %v340_v23 = vand.u32 8388607, %v333_v18 }
  0x68   : > { %vm230_vm15 = vcmp.le.f32.partialorder %v229_v16, 0.7853982 }
  0x69   : > { %v812_v24 = vadd.s32 4294967169, %v233_v20  ;;  %v816_v25 = vadd.s32 4294967169, %v337_v22  ;;  %v237_v27 = vor.u32 8388608, %v236_v21  ;;  %v341_v28 = vor.u32 8388608, %v340_v23 }
  0x6b   : > { %v239_v26 = vadd.s32 1, %v812_v24  ;;  %v343_v29 = vadd.s32 1, %v816_v25  ;;  %v1287_v34 = vshll.u32 %v237_v27, 8  ;;  %v1289_v36 = vshll.u32 %v341_v28, 8 }
  0x6d   : > { %vm240_vm0 = vcmp.gt.s32.totalorder %v239_v26, 0  ;;  %vm344_vm1 = vcmp.gt.s32.totalorder %v343_v29, 0 }
  0x6e   : > { %v241_v30 = vsel %vm240_vm0, %v239_v26, 0  ;;  %v345_v33 = vsel %vm344_vm1, %v343_v29, 0  ;;  %vm335_vm0 = vcmp.lt.s32.totalorder %v1277_v15, 0  ;;  %vm334_vm1 = vcmp.le.f32.partialorder %v333_v18, 0.7853982 }
  0x6f   : > { %v242_v31 = vshrl.u32 %v241_v30, 5  ;;  %v243_v32 = vand.u32 31, %v241_v30  ;;  %v347_v35 = vand.u32 31, %v345_v33  ;;  %v1291_v48 = vshrl.u32 %v345_v33, 5 }
  0x71   : > { %v244_v37 = vsub.s32 32, %v243_v32  ;;  %v246_v39 = vshll.u32 %v1079_v38, %v243_v32  ;;  %v249_v41 = vshll.u32 %v1080_v40, %v243_v32  ;;  %v252_v43 = vshll.u32 %v1081_v42, %v243_v32 }
  0x72   : > { %v255_v45 = vshll.u32 %v1082_v44, %v243_v32  ;;  %v258_v47 = vshll.u32 %v1083_v46, %v243_v32  ;;  %vm261_vm2 = vcmp.lt.s32.totalorder %v242_v31, 1  ;;  %vm262_vm3 = vcmp.lt.s32.totalorder %v242_v31, 2 }
  0x73   : > { %v245_v49 = vshrl.u32 %v1079_v38, %v244_v37  ;;  %v247_v50 = vshrl.u32 %v1080_v40, %v244_v37  ;;  %v250_v51 = vshrl.u32 %v1081_v42, %v244_v37  ;;  %v253_v52 = vshrl.u32 %v1082_v44, %v244_v37 }
  0x74   : > { %v256_v53 = vshrl.u32 %v1083_v46, %v244_v37  ;;  %v259_v55 = vshrl.u32 %v1084_v54, %v244_v37  ;;  %vm264_vm4 = vcmp.lt.s32.totalorder %v242_v31, 4  ;;  %v348_v59 = vsub.s32 32, %v347_v35 }
  0x75   : > { %v248_v56 = vor.u32 %v247_v50, %v246_v39  ;;  %v251_v57 = vor.u32 %v250_v51, %v249_v41  ;;  %v254_v58 = vor.u32 %v253_v52, %v252_v43  ;;  %vm263_vm5 = vcmp.lt.s32.totalorder %v242_v31, 3 }
  0x76   : > { %v257_v60 = vor.u32 %v256_v53, %v255_v45  ;;  %v260_v61 = vor.u32 %v259_v55, %v258_v47  ;;  %v350_v62 = vshll.u32 %v1079_v38, %v347_v35  ;;  %v353_v8 = vshll.u32 %v1080_v40, %v347_v35 }
  0x77   : > { %v265_v63 = vsel %vm261_vm2, %v245_v49, %v248_v56  ;;  %v266_v2 = vsel %vm264_vm4, %v254_v58, 2102212464  ;;  %v269_v3 = vsel %vm261_vm2, %v248_v56, %v251_v57  ;;  %v273_v4 = vsel %vm261_vm2, %v251_v57, %v254_v58 }
  0x78   : > { %v267_v5 = vsel %vm263_vm5, %v251_v57, %v266_v2  ;;  %v270_v6 = vsel %vm264_vm4, %v257_v60, 920167782  ;;  %v274_v7 = vsel %vm264_vm4, %v260_v61, 1326507024  ;;  %v349_v11 = vshrl.u32 %v1079_v38, %v348_v59 }
  0x79   : > { %v271_v9 = vsel %vm263_vm5, %v254_v58, %v270_v6  ;;  %v275_v10 = vsel %vm263_vm5, %v257_v60, %v274_v7  ;;  %v351_v12 = vshrl.u32 %v1080_v40, %v348_v59  ;;  %v268_v13 = vsel %vm262_vm3, %v265_v63, %v267_v5 }
  0x7a   : > { %v272_v17 = vsel %vm262_vm3, %v269_v3, %v271_v9  ;;  %v276_v19 = vsel %vm262_vm3, %v273_v4, %v275_v10  ;;  %v354_v20 = vshrl.u32 %v1081_v42, %v348_v59  ;;  %v356_v27 = vshll.u32 %v1081_v42, %v347_v35 }
  0x7b   : > { %v1300_v21 = vmul.u32.u64.low %v1287_v34, %v276_v19  ;;  %v1301_v22 = vmul.u32.u64.high %v1287_v34, %v276_v19, %v1300_v21  ;;  %v1304_v23 = vmul.u32.u64.low %v1287_v34, %v272_v17  ;;  %v1305_v24 = vmul.u32.u64.high %v1287_v34, %v272_v17, %v1304_v23 }
  0x7c   : > { %v352_v25 = vor.u32 %v351_v12, %v350_v62  ;;  %v355_v26 = vor.u32 %v354_v20, %v353_v8  ;;  %v357_v28 = vshrl.u32 %v1082_v44, %v348_v59  ;;  %v359_v29 = vshll.u32 %v1082_v44, %v347_v35 }
  0x7d   : > { %v360_v30 = vshrl.u32 %v1083_v46, %v348_v59  ;;  %v362_v32 = vshll.u32 %v1083_v46, %v347_v35  ;;  %v363_v33 = vshrl.u32 %v1084_v54, %v348_v59  ;;  %v284_v31 = vmul.u32 %v1287_v34, %v268_v13 }
  0x7e   : > { %v358_v37 = vor.u32 %v357_v28, %v356_v27  ;;  %vm365_vm6 = vcmp.lt.s32.totalorder %v1291_v48, 1  ;;  %vm366_vm7 = vcmp.lt.s32.totalorder %v1291_v48, 2  ;;  %vm286_vm8 = vc.u32 %v1301_v22, %v1304_v23 }
  0x7f   : > { %v287_v38 = vadd.s32 1, %v1305_v24  ;;  %v361_v39 = vor.u32 %v360_v30, %v359_v29  ;;  %vm367_vm9 = vcmp.lt.s32.totalorder %v1291_v48, 3  ;;  %v364_v40 = vor.u32 %v363_v33, %v362_v32 }
  0x80   : > { %vm368_vm10 = vcmp.lt.s32.totalorder %v1291_v48, 4  ;;  %v369_v41 = vsel %vm365_vm6, %v349_v11, %v352_v25  ;;  %v373_v35 = vsel %vm365_vm6, %v352_v25, %v355_v26  ;;  %v377_v44 = vsel %vm365_vm6, %v355_v26, %v358_v37 }
  0x81   : > { %v288_v42 = vsel %vm286_vm8, %v287_v38, %v1305_v24  ;;  %v370_v34 = vsel %vm368_vm10, %v358_v37, 2102212464  ;;  %v374_v43 = vsel %vm368_vm10, %v361_v39, 920167782  ;;  %v378_v49 = vsel %vm368_vm10, %v364_v40, 1326507024 }
  0x82   : > { %v289_v45 = vadd.s32 %v288_v42, %v284_v31  ;;  %v371_v46 = vsel %vm367_vm9, %v355_v26, %v370_v34  ;;  %v375_v47 = vsel %vm367_vm9, %v358_v37, %v374_v43  ;;  %v379_v52 = vsel %vm367_vm9, %v361_v39, %v378_v49 }
  0x83   : > { %v372_v50 = vsel %vm366_vm7, %v369_v41, %v371_v46  ;;  %v376_v51 = vsel %vm366_vm7, %v373_v35, %v375_v47  ;;  %v380_v54 = vsel %vm366_vm7, %v377_v44, %v379_v52  ;;  %v285_v11 = vadd.s32 %v1304_v23, %v1301_v22 }
  0x84   : > { %v290_v53 = vadd.s32 536870912, %v289_v45  ;;  %v1322_v55 = vmul.u32.u64.low %v1289_v36, %v376_v51  ;;  %v1323_v56 = vmul.u32.u64.high %v1289_v36, %v376_v51, %v1322_v55  ;;  %v388_v60 = vmul.u32 %v1289_v36, %v372_v50 }
  0x85   : > { %v1326_v57 = vmul.u32.u64.low %v1289_v36, %v380_v54  ;;  %v1327_v58 = vmul.u32.u64.high %v1289_v36, %v380_v54, %v1326_v57  ;;  %vm321_vm8 = vweird.f32 %v1275_v14 }
  0x86   : > { %v291_v59 = vshrl.u32 %v290_v53, 30  ;;  %v391_v62 = vadd.s32 1, %v1323_v56 }
  0x87   : > { %vm390_vm11 = vc.u32 %v1327_v58, %v1322_v55  ;;  %v389_v32 = vadd.s32 %v1322_v55, %v1327_v58 }
  0x88   : > { %v292_v61 = vshll.u32 %v291_v59, 30  ;;  %v392_v48 = vsel %vm390_vm11, %v391_v62, %v1323_v56  ;;  %v315_v35 = vsub.s32 4, %v291_v59 }
  0x89   : > { %v393_v2 = vadd.s32 %v392_v48, %v388_v60 }
  0x8a   : > { %v293_v63 = vsub.s32 %v289_v45, %v292_v61  ;;  %v316_v47 = vsel %vm231_vm14, %v315_v35, %v291_v59 }
  0x8b   : > { %v394_v4 = vadd.s32 536870912, %v393_v2  ;;  %v318_v51 = vsel %vm230_vm15, 0, %v316_v47 }
  0x8c   : > { %v295_v3 = vsub.s32 0, %v293_v63  ;;  %v322_v54 = vadd.s32 3, %v318_v51  ;;  %v530_v60 = vand.u32 3, %v318_v51 }
  0x8d   : > { %v395_v6 = vshrl.u32 %v394_v4, 30 }
  0x8e   : > { %v813_v5 = vmin.u32 %v295_v3, %v293_v63  ;;  %v323_v59 = vand.u32 3, %v322_v54  ;;  %vm532_vm4 = vcmp.eq.s32.totalorder %v530_v60, 0  ;;  %vm535_vm5 = vcmp.eq.s32.totalorder %v530_v60, 2 }
  0x8f   : > { %v396_v8 = vshll.u32 %v395_v6, 30  ;;  %v419_v50 = vsub.s32 4, %v395_v6  ;;  %vm531_vm7 = vcmp.lt.s32.totalorder %v530_v60, 2 }
  0x90   : > { %v297_v7 = vclz %v813_v5  ;;  %vm325_vm2 = vcmp.eq.s32.totalorder %v323_v59, 0  ;;  %vm328_vm3 = vcmp.eq.s32.totalorder %v323_v59, 2  ;;  %vm324_vm6 = vcmp.lt.s32.totalorder %v323_v59, 2 }
  0x91   : > { %v397_v10 = vsub.s32 %v393_v2, %v396_v8  ;;  %v420_v53 = vsel %vm335_vm0, %v419_v50, %v395_v6  ;;  %v1085_v2 = vmov 1966171168  }
  0x92   : > { %v814_v9 = vadd.s32 4294967294, %v297_v7  ;;  %v422_v57 = vsel %vm334_vm1, 0, %v420_v53  ;;  %v647_v3 = vunpack.c.l.s4 %v1085_v2 }
  0x93   : > { %v399_v12 = vsub.s32 0, %v397_v10  ;;  %v426_v62 = vadd.s32 3, %v422_v57  ;;  %v633_v4 = vand.u32 3, %v422_v57 }
  0x94   : > { %vm815_vm12 = vcmp.lt.s32.totalorder %v814_v9, 0 }
  0x95   : > { %v300_v36 = vsel %vm815_vm12, 0, %v814_v9  ;;  %v817_v20 = vmin.u32 %v399_v12, %v397_v10  ;;  %v427_v18 = vand.u32 3, %v426_v62  ;;  %v648_v9 = vunpack.c.0.s8 %v647_v3 }
  0x96   : > { %v301_v13 = vsub.s32 32, %v300_v36  ;;  %v302_v17 = vshll.u32 %v293_v63, %v300_v36  ;;  %v305_v19 = vsub.s32 4294967266, %v300_v36  ;;  %vm635_vm10 = vcmp.eq.s32.totalorder %v633_v4, 0 }
  0x97   : > { %v401_v25 = vclz %v817_v20  ;;  %vm432_vm9 = vcmp.eq.s32.totalorder %v427_v18, 2  ;;  %vm638_vm11 = vcmp.eq.s32.totalorder %v633_v4, 2  ;;  %vm429_vm12 = vcmp.eq.s32.totalorder %v427_v18, 0 }
  0x98   : > { %v303_v21 = vshrl.u32 %v285_v11, %v301_v13  ;;  %v306_v24 = vadd.s32 127, %v305_v19 }
  0x99   : > { %v818_v28 = vadd.s32 4294967294, %v401_v25 }
  0x9a   : > { %v304_v26 = vor.u32 %v303_v21, %v302_v17  ;;  %v307_v27 = vshll.u32 %v306_v24, 23 }
  0x9b   : > { %vm819_vm13 = vcmp.lt.s32.totalorder %v818_v28, 0 }
  0x9c   : > { %v308_v29 = vor.u32 4788187, %v307_v27  ;;  %v311_v30 = vcvt.s32.f32 %v304_v26  ;;  %v404_v22 = vsel %vm819_vm13, 0, %v818_v28  ;;  %vm428_vm13 = vcmp.lt.s32.totalorder %v427_v18, 2 }
  0x9d   : > { %v405_v23 = vsub.s32 32, %v404_v22  ;;  %v406_v31 = vshll.u32 %v397_v10, %v404_v22  ;;  %v409_v37 = vsub.s32 4294967266, %v404_v22 }
  0x9e   : > { %v309_v33 = vand.u32 2147483647, %v308_v29  ;;  %v651_v29 = vsub.s32 %v648_v9, %v1270_v1 }
  0x9f   : > { %v407_v39 = vshrl.u32 %v389_v32, %v405_v23  ;;  %v410_v40 = vadd.s32 127, %v409_v37  ;;  %v195_v32 = vld [vmem:[#allocation2 + $0x2] ss:$4 sm:$0x3] }
  0xa0   : > { %v312_v38 = vmul.f32 %v311_v30, %v309_v33 }
  0xa1   : > { %v408_v42 = vor.u32 %v407_v39, %v406_v31  ;;  %v411_v34 = vshll.u32 %v410_v40, 23 }
  0xa2   : > { %v313_v41 = vxor.u32 2147483648, %v312_v38 }
  0xa3   : > { %v412_v45 = vor.u32 4788187, %v411_v34  ;;  %v415_v46 = vcvt.s32.f32 %v408_v42 }
  0xa4   : > { %v314_v43 = vsel %vm231_vm14, %v313_v41, %v312_v38  ;;  %vm634_vm14 = vcmp.lt.s32.totalorder %v633_v4, 2  ;;  %v680_v38 = vld [vmem:[%s1263_s3] sm:$0x3] }
  0xa5   : > { %v317_v44 = vsel %vm230_vm15, %v1275_v14, %v314_v43  ;;  %v413_v49 = vand.u32 2147483647, %v412_v45  ;;  %vm425_vm15 = vweird.f32 %v1277_v15 }
  0xa6   : > { %923 = vcosq.f32 %v317_v44 }
  0xa7   : > { %925 = vsinq.f32 %v317_v44  ;;  %v416_v52 = vmul.f32 %v415_v46, %v413_v49 }
  0xa9   : > { %v417_v16 = vxor.u32 2147483648, %v416_v52 }
  0xab   : > { %v418_v55 = vsel %vm335_vm0, %v417_v16, %v416_v52  ;;  %vm228_vm0 = vcmp.gt.f32.partialorder %v195_v32, 0.5 }
  0xac   : > { %v421_v56 = vsel %vm334_vm1, %v1277_v15, %v418_v55  ;;  %vm684_vm1 = vcmp.lt.s32.totalorder %v196_v0, 256 }
  0xad   : > { %927 = vcosq.f32 %v421_v56 }
  0xae   : > { %929 = vsinq.f32 %v421_v56 }
  0xb0   : > { %v924_v58 = vpop.eup %923 }
  0xb1   : > { %v926_v61 = vpop.eup %925  ;;  %v329_v48 = vxor.u32 2147483648, %v924_v58 }
  0xb2   : > { %v326_v63 = vxor.u32 2147483648, %v926_v61 }
  0xb3   : > { %v330_v6 = vsel %vm328_vm3, %v329_v48, %v926_v61  ;;  %v537_v8 = vsel %vm535_vm5, %v329_v48, %v926_v61 }
  0xb4   : > { %v327_v5 = vsel %vm325_vm2, %v924_v58, %v326_v63  ;;  %v534_v7 = vsel %vm532_vm4, %v924_v58, %v326_v63 }
  0xb5   : > { %v331_v36 = vsel %vm324_vm6, %v327_v5, %v330_v6  ;;  %v538_v13 = vsel %vm531_vm7, %v534_v7, %v537_v8 }
  0xb6   : > { %v332_v21 = vsel %vm321_vm8, nan, %v331_v36  ;;  %v539_v25 = vsel %vm321_vm8, nan, %v538_v13 }
  0xb7   : > { %v928_v10 = vpop.eup %927 }
  0xb8   : > { %v930_v11 = vpop.eup %929  ;;  %v433_v12 = vxor.u32 2147483648, %v928_v10 }
  0xb9   : > { %v430_v17 = vxor.u32 2147483648, %v930_v11 }
  0xba   : > { %v434_v19 = vsel %vm432_vm9, %v433_v12, %v930_v11  ;;  %v640_v20 = vsel %vm638_vm11, %v433_v12, %v930_v11 }
  0xbb   : > { %v431_v24 = vsel %vm429_vm12, %v928_v10, %v430_v17  ;;  %v637_v26 = vsel %vm635_vm10, %v928_v10, %v430_v17 }
  0xbc   : > { %v435_v27 = vsel %vm428_vm13, %v431_v24, %v434_v19  ;;  %v641_v28 = vsel %vm634_vm14, %v637_v26, %v640_v20 }
  0xbd   : > { %v436_v30 = vsel %vm425_vm15, nan, %v435_v27  ;;  %v642_v15 = vsel %vm425_vm15, nan, %v641_v28 }
  0xbe   : > { %v645_v33 = vcombine.low %v332_v21, %v436_v30  ;;  %v663_v22 = vcombine.low %v539_v25, %v642_v15 }
  0xc0   : > { %v652_v23 = vrot.slane %v645_v33, %v651_v29  ;;  %v670_v31 = vrot.slane %v663_v22, %v651_v29 }
  0xc2   : > { %v659_v14 = vrot.slane %v652_v23, %v651_v29  ;;  %v677_v37 = vrot.slane %v670_v31, %v651_v29 }
  0xc4   : > { %v679_v39 = vsel %vm228_vm0, %v659_v14, %v677_v37 }
  0xc5   : > { %v681_v1 = vadd.f32 %v680_v38, %v679_v39 }
  0xc7   : > { %686 = vst.msk [vmem:[%s190_s19] sm:$0x3] %vm684_vm1, %v681_v1 }
  0xc8   : > { %1002 = shalt.err (!%p999_p5)
}
  0xc9   : > { %s1003_s24 = scalar_lea.hbm %s1359_s7, 32  ;;  %s1007_s30 = scalar_lea.hbm %s1410_s2, 64 }
  0xca   : > { %p1004_p10 = scmp.ne.s32.totalorder %s1359_s7, %s1003_s24  ;;  %p1008_p7 = scmp.lt.u32.totalorder %s1359_s7, %s1410_s2 }
  0xcb   : > { %p1009_p3 = scmp.lt.u32.totalorder %s1007_s30, %s1003_s24  ;;  %p1011_p4 = scmp.lt.u32.totalorder %s1003_s24, %s1359_s7 }
  0xcc   : > { %p1005_p1 = pnand %p1004_p10, %p1203_p13 }
  0xcd   : > { %p1010_p11 = por %p1009_p3, %p1008_p7 }
  0xce   : > { %p1006_p2 = pneg %p1005_p1 }
  0xcf   : > { %p1012_p6 = por %p1011_p4, %p1010_p11 }
  0xd1   : > { %p1013_p8 = pnand %p1012_p6, %p1006_p2 }
  0xd3   : > { %1016 = shalt.err (!%p1013_p8)
}
  0xd4   : > { %849 = dma.vmem_to_hbm [thread:$0]  (%p1203_p13), %s1361_s21, 32, %s1359_s7, %s688_s8  }
  0xd5 PF: > { %s716_s6 = sand.u32 1, %s1055_s9   ;;  %p1429_p9 = scmp.ne.s32.totalorder %s1418_s20, 0 }
  0xd6   : > { %p1430_p12 = scmp.ge.s32.totalorder %s1075_s14, 2  ;;  %s717_s3 = scalar_lea.sflag [#allocation4], %s716_s6 }
  0xd8   : > { %p860_p0 = pnand %p1430_p12, %p1429_p9 }
  0xda   : > { %1050 = dma.done.wait (!%p860_p0), %s717_s3, 32  }
  0xdb   : > { %1052 = vsyncadd (!%p860_p0), %s717_s3, 4294967264  ;;  %s19_s14 = sadd.s32 1, %s1075_s14   ;;  %s1431_s9 = smov %s1059_s10 }
  0xdc   : > { %p16_p5 = scmp.ge.s32.totalorder %s19_s14, 4   ;;  %s1432_s10 = smov %s1063_s11 }
  0xdd   : > { %s1433_s11 = smov %s1211_s28  ;;  %s1434_s12 = smov %s1071_s13 }
  0xde   : > { %s1435_s13 = smov %s1437_s25  ;;  %18 = sbr.rel (!%p16_p5) target bundleno = 7 (0x7), region = 80 }
  0xe5   :  { %722 = vsyncpa [#allocation3], 1 }
  0xe6   :  { %724 = vsyncpa [#allocation3 + $0x1], 1 }
  0xe7   :  { %725 = vsyncpa [#allocation6], 1 }
  0xe8   :  { %727 = vsyncpa [#allocation6 + $0x1], 1 }
  0xe9   :  { %728 = vsyncpa [#allocation4], 1 }
  0xea   :  { %730 = vsyncpa [#allocation4 + $0x1], 1 }

</bundles_post_ra>
